<compile_context>
chip_gen: v6e
topology: v6e:2x2x1
jax: 0.10.0
libtpu: 0.0.40
codegen_flags: <defaults>
</compile_context>

<pallas_src>
import functools

import numpy as np
import jax
import jax.numpy as jnp
from jax import lax
from jax.experimental import pallas as pl
from jax.experimental.pallas import tpu as pltpu

_LANES = 128
_MAX_STRIP_ROWS = 256       # 256*128*4B = 128 KiB of f32 temps per strip
_FAST_PATH_ELEMS = 1024     # below this, pallas_call launch overhead dominates
                            # (can be raised to ~64K elements in production)


def _partial_sumsq_kernel(x_ref, y_ref, o_ref, *, tm, strip, rem):
    """Per-tile partial sum of squared differences.

    x_ref, y_ref : (tm, 128) tiles of the flattened operands (native dtype).
    o_ref        : (1, 8, 128) f32 lane/sublane-wise partial sum for this tile.
    tm, strip    : static ints; strip divides tm, both multiples of 8.
    rem          : static int; number of VALID elements in the LAST grid tile
                   (== tm*128 when no masking is needed anywhere).
    """

    def strip_sums(masked):
        def body(s, acc):
            r0 = pl.multiple_of(s * strip, strip)
            xs = x_ref[pl.ds(r0, strip), :].astype(jnp.float32)
            ys = y_ref[pl.ds(r0, strip), :].astype(jnp.float32)
            d = xs - ys
            sq = d * d
            if masked:
                row = lax.broadcasted_iota(jnp.int32, (strip, _LANES), 0)
                lane = lax.broadcasted_iota(jnp.int32, (strip, _LANES), 1)
                lidx = (r0 + row) * _LANES + lane   # local index within this tile
                sq = jnp.where(lidx < rem, sq, 0.0)
            return acc + jnp.sum(sq.reshape(strip // 8, 8, _LANES), axis=0)

        acc0 = jnp.zeros((8, _LANES), jnp.float32)
        return lax.fori_loop(0, tm // strip, body, acc0)

    if rem == tm * _LANES:
        # Every tile (including the last) is fully valid: one clean hot path.
        o_ref[...] = strip_sums(False)[None]
    else:
        i = pl.program_id(0)
        last = pl.num_programs(0) - 1

        @pl.when(i != last)
        def _():
            o_ref[...] = strip_sums(False)[None]

        @pl.when(i == last)
        def _():
            o_ref[...] = strip_sums(True)[None]


def _default_block_rows(itemsize):
    """~4 MiB per pipelined input buffer on v6e/v7x, ~2 MiB on v5e."""
    kind = ""
    try:
        kind = jax.devices()[0].device_kind.lower()
    except Exception:  # pragma: no cover
        pass
    is_v5e = ("v5 lite" in kind) or ("v5e" in kind) or ("v5lite" in kind)
    target_bytes = (2 << 20) if is_v5e else (4 << 20)
    return max(_MAX_STRIP_ROWS, target_bytes // (_LANES * itemsize))


def mse_loss(inputs, target, *, block_rows=None):
    """Pallas TPU MSE loss, reduction='mean' (matches torch.nn.MSELoss())."""
    assert inputs.shape == target.shape, (inputs.shape, target.shape)
    n = int(np.prod(inputs.shape))
    assert n > 0, "MSE of an empty tensor is undefined"

    out_dtype = jnp.promote_types(inputs.dtype, target.dtype)
    if not jnp.issubdtype(out_dtype, jnp.floating):
        out_dtype = jnp.float32

    # TPU vregs are 32-bit; downcast wider dtypes (rare) before streaming.
    if jnp.dtype(inputs.dtype).itemsize > 4:
        inputs = inputs.astype(jnp.float32)
    if jnp.dtype(target.dtype).itemsize > 4:
        target = target.astype(jnp.float32)

    # Tiny-input fast path: fixed pallas_call launch overhead dominates.
    if n < _FAST_PATH_ELEMS:
        d = inputs.astype(jnp.float32) - target.astype(jnp.float32)
        return (jnp.sum(d * d) / jnp.float32(n)).astype(out_dtype)

    itemsize = max(jnp.dtype(inputs.dtype).itemsize,
                   jnp.dtype(target.dtype).itemsize)
    # Sublane packing: 8 rows for 32-bit, 16 for 16-bit, 32 for 8-bit dtypes.
    row_mult = 8 * (4 // itemsize)
    pad_elems = row_mult * _LANES

    x = inputs.reshape(-1)
    y = target.reshape(-1)
    n_pad = (-n) % pad_elems          # < pad_elems; usually 0 for ML shapes
    if n_pad:
        x = jnp.pad(x, (0, n_pad))    # small pad only; zeros contribute 0
        y = jnp.pad(y, (0, n_pad))
    rows = (n + n_pad) // _LANES      # multiple of row_mult

    if block_rows is None:
        block_rows = _default_block_rows(itemsize)
    block_rows = max(row_mult, (int(block_rows) // row_mult) * row_mult)
    tm = min(block_rows, rows)
    num_tiles = -(-rows // tm)        # last tile may be ragged: masked in-kernel
    rem = n - (num_tiles - 1) * tm * _LANES   # valid elems in last tile (static)

    # Strip size: largest power-of-two <= _MAX_STRIP_ROWS that divides tm.
    strip = _MAX_STRIP_ROWS
    while tm % strip:
        strip //= 2

    x2 = x.reshape(rows, _LANES)      # bitcast reshape (lane-dense layout)
    y2 = y.reshape(rows, _LANES)

    block_bytes = tm * _LANES * itemsize
    vmem_limit = int(min(max(32 << 20, 8 * block_bytes + (8 << 20)), 48 << 20))

    kernel = functools.partial(_partial_sumsq_kernel, tm=tm, strip=strip, rem=rem)

    partial = pl.pallas_call(
        kernel,
        out_shape=jax.ShapeDtypeStruct((num_tiles, 8, _LANES), jnp.float32),
        grid_spec=pltpu.PrefetchScalarGridSpec(
            num_scalar_prefetch=0,
            grid=(num_tiles,),
            in_specs=[
                pl.BlockSpec((tm, _LANES), lambda i: (i, 0)),
                pl.BlockSpec((tm, _LANES), lambda i: (i, 0)),
            ],
            out_specs=pl.BlockSpec((1, 8, _LANES), lambda i: (i, 0, 0)),
        ),
        compiler_params=pltpu.CompilerParams(
            dimension_semantics=("parallel",),
            vmem_limit_bytes=vmem_limit,
        ),
        cost_estimate=pl.CostEstimate(
            flops=3 * n,
            transcendentals=0,
            bytes_accessed=(2 * n * itemsize) + num_tiles * 8 * _LANES * 4,
        ),
    )(x2, y2)

    # Tiny final cross-tile + lane/sublane reduce, then the mean over true n.
    return (jnp.sum(partial) / jnp.float32(n)).astype(out_dtype)


if __name__ == "__main__":
    key = jax.random.PRNGKey(0)
    k = jax.random.split(key, 8)

    # 1) Primary example: (B, C, H, W) = (2, 4, 16, 16) feature map, f32.
    x = jax.random.normal(k[0], (2, 4, 16, 16), dtype=jnp.float32)
    t = jax.random.normal(k[1], (2, 4, 16, 16), dtype=jnp.float32)
    loss = jax.block_until_ready(mse_loss(x, t))
    ref = jnp.mean((x - t) ** 2)
    np.testing.assert_allclose(float(loss), float(ref), rtol=1e-5, atol=1e-6)

    # 2) Ragged element count (exercises the small slab pad + in-kernel mask).
    x2 = jax.random.normal(k[2], (3, 5, 67, 19), dtype=jnp.float32)
    t2 = jax.random.normal(k[3], (3, 5, 67, 19), dtype=jnp.float32)
    loss2 = jax.block_until_ready(mse_loss(x2, t2))
    ref2 = jnp.mean((x2 - t2) ** 2)
    np.testing.assert_allclose(float(loss2), float(ref2), rtol=1e-5, atol=1e-6)

    # 3) Multi-tile grid with a ragged LAST TILE and zero padding
    #    (rows=24, block_rows=16 -> 2 tiles, second tile half out-of-bounds).
    x3 = jax.random.normal(k[4], (3, 8, 128), dtype=jnp.float32)
    t3 = jax.random.normal(k[5], (3, 8, 128), dtype=jnp.float32)
    loss3 = jax.block_until_ready(mse_loss(x3, t3, block_rows=16))
    ref3 = jnp.mean((x3 - t3) ** 2)
    np.testing.assert_allclose(float(loss3), float(ref3), rtol=1e-5, atol=1e-6)

    # 4) Tiny input -> fast path (launch overhead dominates below ~1K elements).
    x4 = jax.random.normal(k[6], (3, 5, 7), dtype=jnp.float32)
    t4 = jax.random.normal(k[7], (3, 5, 7), dtype=jnp.float32)
    loss4 = jax.block_until_ready(mse_loss(x4, t4))
    ref4 = jnp.mean((x4 - t4) ** 2)
    np.testing.assert_allclose(float(loss4), float(ref4), rtol=1e-5, atol=1e-6)

    print("KERNEL_OK")
</pallas_src>

<mosaic_0001>
module attributes {stable_mosaic.version = 11 : i64} {
  func.func @_partial_sumsq_kernel(%arg0: i32, %arg1: memref<16x128xf32, #tpu.memory_space<vmem>>, %arg2: memref<16x128xf32, #tpu.memory_space<vmem>>, %arg3: memref<1x8x128xf32, #tpu.memory_space<vmem>>) attributes {dimension_semantics = [#tpu.dimension_semantics<parallel>], iteration_bounds = array<i64: 1>, scalar_prefetch = 0 : i64, scratch_operands = 0 : i64, tpu.core_type = #tpu.core_type<tc>, window_params = [{transform_indices = @transform_0, window_bounds = array<i64: 16, 128>}, {transform_indices = @transform_1, window_bounds = array<i64: 16, 128>}, {transform_indices = @transform_2, window_bounds = array<i64: 1, 8, 128>}]} {
    %cst = arith.constant 0.000000e+00 : f32
    %0 = vector.broadcast %cst : f32 to vector<8x128xf32>
    %c0_i32 = arith.constant 0 : i32
    %c16_i32 = arith.constant 16 : i32
    %1 = arith.muli %c0_i32, %c16_i32 : i32
    %2 = tpu.assume_multiple %1, 16 : i32
    %3 = arith.index_cast %2 : i32 to index
    %c0 = arith.constant 0 : index
    %4 = vector.load %arg1[%3, %c0] : memref<16x128xf32, #tpu.memory_space<vmem>>, vector<16x128xf32>
    %5 = arith.index_cast %2 : i32 to index
    %c0_0 = arith.constant 0 : index
    %6 = vector.load %arg2[%5, %c0_0] : memref<16x128xf32, #tpu.memory_space<vmem>>, vector<16x128xf32>
    %7 = arith.subf %4, %6 : vector<16x128xf32>
    %8 = arith.mulf %7, %7 : vector<16x128xf32>
    %9 = vector.shape_cast %8 : vector<16x128xf32> to vector<2x8x128xf32>
    %cst_1 = arith.constant dense<0.000000e+00> : vector<8x128xf32>
    %10 = vector.multi_reduction <add>, %9, %cst_1 [0] : vector<2x8x128xf32> to vector<8x128xf32>
    %11 = arith.addf %0, %10 : vector<8x128xf32>
    %c1_i32 = arith.constant 1 : i32
    %12 = vector.shape_cast %11 : vector<8x128xf32> to vector<1x8x128xf32>
    %c0_2 = arith.constant 0 : index
    %c0_3 = arith.constant 0 : index
    %c0_4 = arith.constant 0 : index
    %13 = vector.load %arg3[%c0_2, %c0_3, %c0_4] : memref<1x8x128xf32, #tpu.memory_space<vmem>>, vector<1x8x128xf32>
    tpu.vector_store %arg3[%c0_2, %c0_3, %c0_4], %12 {strides = array<i32>} : memref<1x8x128xf32, #tpu.memory_space<vmem>>, vector<1x8x128xf32>,
    return
  }
  func.func @transform_0(%arg0: i32) -> (i32, i32) {
    %c0_i32 = arith.constant 0 : i32
    %c0_i32_0 = arith.constant 0 : i32
    return %arg0, %c0_i32 : i32, i32
  }
  func.func @transform_1(%arg0: i32) -> (i32, i32) {
    %c0_i32 = arith.constant 0 : i32
    %c0_i32_0 = arith.constant 0 : i32
    return %arg0, %c0_i32 : i32, i32
  }
  func.func @transform_2(%arg0: i32) -> (i32, i32, i32) {
    %c0_i32 = arith.constant 0 : i32
    %c0_i32_0 = arith.constant 0 : i32
    %c0_i32_1 = arith.constant 0 : i32
    return %arg0, %c0_i32, %c0_i32_0 : i32, i32, i32
  }
}

</mosaic_0001>

<bundles_post_ra>
// kernel: tpu_custom_call.1
= control target key start
LH: loop header
LB: loop body
LE: loop exit
PB: predicated region body
PF: predicated region fallthrough
CT: control target
= control target key end

     0   :  { %7 = vsyncpa [#allocation3], 0  ;;  %s167_s0 = inlined_call_operand.hbm [shape: f32[16,128], index: 0, kind: input, shape index: {}]   ;;  %s168_s1 = inlined_call_operand.hbm [shape: f32[16,128], index: 1, kind: input, shape index: {}]   ;;  %s169_s2 = inlined_call_operand.hbm [shape: f32[1,8,128], index: 2, kind: output, shape index: {}]  }
   0x1   :  { %8 = vsyncpa [#allocation6], 0 }
   0x2   :  { %9 = vsyncpa [#allocation4], 0  ;;  %s138_s9 = smov [#allocation2]  }
   0x3   :  { %s15_s10 = sshll.u32 %s138_s9, 4  ;;  %s16_s10 = int_to_ptr.vmem [resolvable:$true] %s15_s10 }
   0x4   :  { %s80_s11 = scalar_lea.vmem %s16_s10, 256  ;;  %p85_p1 = scmp.lt.s32.totalorder %s16_s10, %s16_s10 }
   0x5   :  { %p81_p0 = scmp.ne.s32.totalorder %s16_s10, %s80_s11  ;;  %p86_p2 = scmp.lt.s32.totalorder %s80_s11, %s80_s11 }
   0x7   :  { %p87_p3 = por %p86_p2, %p85_p1 }
   0x9   :  { %p88_p4 = pnand %p87_p3, %p81_p0 }
   0xb   :  { %91 = shalt.err (!%p88_p4)
}
   0xc   :  { %s139_s12 = smov 128   ;;  %s140_s13 = smov 8  }
   0xd   :  { %21 = dma.hbm_to_vmem [thread:$0]  %s167_s0, 256, %s16_s10, [#allocation3], %s139_s12, %s139_s12, %s140_s13  }
   0xe   :  { %s141_s16 = smov [#allocation5]  }
   0xf   :  { %s27_s17 = sshll.u32 %s141_s16, 4  ;;  %s28_s17 = int_to_ptr.vmem [resolvable:$true] %s27_s17 }
  0x10   :  { %s100_s18 = scalar_lea.vmem %s28_s17, 256  ;;  %p105_p6 = scmp.lt.s32.totalorder %s28_s17, %s28_s17 }
  0x11   :  { %p101_p5 = scmp.ne.s32.totalorder %s28_s17, %s100_s18  ;;  %p106_p7 = scmp.lt.s32.totalorder %s100_s18, %s100_s18 }
  0x13   :  { %p107_p8 = por %p106_p7, %p105_p6 }
  0x15   :  { %p108_p9 = pnand %p107_p8, %p101_p5 }
  0x17   :  { %111 = shalt.err (!%p108_p9)
}
  0x18   :  { %33 = dma.hbm_to_vmem [thread:$0]  %s168_s1, 256, %s28_s17, [#allocation6], %s139_s12, %s139_s12, %s140_s13  }
  0x19   :  { %132 = dma.done.wait [#allocation3], 256  }
  0x1a   :  { %133 = vsyncadd [#allocation3], 4294967040 }
  0x1b   :  { %134 = dma.done.wait [#allocation6], 256  }
  0x1c   :  { %135 = vsyncadd [#allocation6], 4294967040  ;;  %v40_v0 = vld [vmem:[#allocation2] sm:$0xff]  ;;  %v41_v1 = vld [vmem:[#allocation2 + $0x8] sm:$0xff]  ;;  %s142_s0 = smov [#allocation7]  }
  0x1d   :  { %v42_v2 = vld [vmem:[#allocation5] sm:$0xff]  ;;  %v43_v3 = vld [vmem:[#allocation5 + $0x8] sm:$0xff]  ;;  %s57_s21 = sshll.u32 %s142_s0, 4  ;;  %s58_s21 = int_to_ptr.vmem [resolvable:$true] %s57_s21 }
  0x1e   :  { %v44_v4 = vsub.f32 %v40_v0, %v42_v2  ;;  %v45_v5 = vsub.f32 %v41_v1, %v43_v3  ;;  %s112_s22 = scalar_lea.vmem %s58_s21, 128  ;;  %p117_p11 = scmp.lt.s32.totalorder %s58_s21, %s58_s21 }
  0x1f   :  { %p113_p10 = scmp.ne.s32.totalorder %s58_s21, %s112_s22  ;;  %p118_p12 = scmp.lt.s32.totalorder %s112_s22, %s112_s22 }
  0x20   :  { %v46_v6 = vmul.f32 %v44_v4, %v44_v4  ;;  %v47_v7 = vmul.f32 %v45_v5, %v45_v5 }
  0x21   :  { %p119_p13 = por %p118_p12, %p117_p11 }
  0x22   :  { %v48_v8 = vadd.f32 %v47_v7, %v46_v6 }
  0x23   :  { %p120_p0 = pnand %p119_p13, %p113_p10 }
  0x24   :  { %50 = vst [vmem:[#allocation7] sm:$0xff] %v48_v8 }
  0x25   :  { %123 = shalt.err (!%p120_p0)
}
  0x26   :  { %60 = dma.vmem_to_hbm [thread:$0]  %s58_s21, 128, %s169_s2, [#allocation4]  }
  0x27   :  { %136 = dma.done.wait [#allocation4], 128  }
  0x28   :  { %137 = vsyncadd [#allocation4], 4294967168 }
  0x29   :  { %64 = vsyncpa [#allocation3], 1 }
  0x2a   :  { %65 = vsyncpa [#allocation6], 1 }
  0x2b   :  { %66 = vsyncpa [#allocation4], 1 }

</bundles_post_ra>
